<compile_context>
chip_gen: v5e
topology: v5e:2x2
jax: 0.10.0
libtpu: 0.0.40
codegen_flags: <defaults>
</compile_context>

<pallas_src>
import functools

import jax
import jax.numpy as jnp
from jax.experimental import pallas as pl
from jax.experimental.pallas import tpu as pltpu


def _round_up(v, m):
    return (v + m - 1) // m * m


def _pad2d(a, rows, cols):
    return jnp.pad(a, ((0, rows - a.shape[0]), (0, cols - a.shape[1])))


_V7X_SAFE_VMEM = 48 * 1024 * 1024      # stay well under v7x's 64 MiB / TensorCore
_VMEM_CAP = 56 * 1024 * 1024           # hard cap we ever request


def _pick_batch_tile(batch):
    """Batch tile: large enough to amortize per-grid-step overhead, small enough
    that (a) zero-padding waste stays <= ~12.5% and (b) the batch ("parallel")
    grid axis has >= 2 steps whenever B >= 16 (so both v7x TensorCores work)."""
    b8 = _round_up(batch, 8)
    tm = 8
    for cand in (16, 32, 64, 128, 256, 512):
        bp = _round_up(b8, cand)
        if (bp - batch) / bp <= 0.125:
            tm = cand
    while tm > 8 and b8 >= 16 and b8 // tm < 2:
        tm //= 2
    return tm, _round_up(b8, tm)


def _vmem_bytes(tm, pp, dp, no, cdt_size):
    """Estimated VMEM working set for one grid step, incl. buffer counts."""
    return (2 * tm * pp * cdt_size          # x tile (double-buffered)
            + 1 * pp * dp * cdt_size        # enc_w (single-buffered)
            + 1 * dp * 4                    # enc_b (f32, single-buffered)
            + 2 * dp * no * cdt_size        # head_w slice (double-buffered)
            + 1 * no * 4                    # head_b (f32, single-buffered)
            + 2 * tm * no * 4               # output tile (double-buffered)
            + tm * no * 4                   # f32 accumulator scratch
            + tm * dp * (4 + cdt_size))     # f32 feats temp + cast copy


# ----------------------------------------------------------------------------
# Fused kernel, grid = (batch_tiles, S):
#   feats_s = tanh(x[:, s] @ enc_w + enc_b)            (per-patch encoder)
#   acc    += feats_s @ head_w[s]                       (regressor head)
#   out     = acc + head_b        (written once at s == S-1)
# ----------------------------------------------------------------------------
def _fused_regressor_kernel(x_ref, ew_ref, eb_ref, hw_ref, hb_ref, o_ref, acc_ref):
    s = pl.program_id(1)

    @pl.when(s == 0)
    def _init():
        acc_ref[...] = jnp.zeros_like(acc_ref)

    # Encoder projection for this patch on the MXU (f32 accumulate),
    # bias + tanh epilogue kept in f32 (v5e has no bf16 VPU/EUP).
    xw = jnp.dot(x_ref[...], ew_ref[...], preferred_element_type=jnp.float32)
    feats = jnp.tanh(xw + eb_ref[...])

    # Regressor-head contribution of this patch's feature block; the features
    # never leave VMEM and torch.flatten is free (sum over per-patch slices).
    acc_ref[...] += jnp.dot(feats.astype(hw_ref.dtype), hw_ref[...],
                            preferred_element_type=jnp.float32)

    @pl.when(s == pl.num_programs(1) - 1)
    def _finalize():
        o_ref[...] = (acc_ref[...] + hb_ref[...]).astype(o_ref.dtype)


# ----------------------------------------------------------------------------
# One-time weight preprocessing (hoisted out of the per-call forward)
# ----------------------------------------------------------------------------
def prepare_params(params, *, encoder_seq_len, encoder_output_dim,
                   compute_dtype=jnp.bfloat16):
    S, D = encoder_seq_len, encoder_output_dim
    enc_w, enc_b = params["enc_w"], params["enc_b"]
    head_w, head_b = params["head_w"], params["head_b"]
    P = enc_w.shape[0]
    O = head_w.shape[1]
    assert head_w.shape[0] == S * D

    Pp = _round_up(P, 128)      # encoder contraction (lane-dense)
    Dp = _round_up(D, 128)      # per-patch feature width (lane-dense)
    NO = _round_up(O, 128)      # head output width (unmasked vst)

    enc_w_p = _pad2d(enc_w, Pp, Dp).astype(compute_dtype)                 # (Pp, Dp)
    enc_b_p = _pad2d(enc_b.reshape(1, D).astype(jnp.float32), 1, Dp)      # (1, Dp)
    # head_w (S*D, O) -> per-patch (S, D, O) -> zero-pad -> stacked (S*Dp, NO)
    hw = head_w.reshape(S, D, O)
    hw = jnp.pad(hw, ((0, 0), (0, Dp - D), (0, NO - O)))
    head_w_p = hw.reshape(S * Dp, NO).astype(compute_dtype)
    head_b_p = _pad2d(head_b.reshape(1, O).astype(jnp.float32), 1, NO)    # (1, NO)

    prepped = dict(enc_w=enc_w_p, enc_b=enc_b_p, head_w=head_w_p, head_b=head_b_p)
    meta = dict(S=S, D=D, P=P, O=O, Pp=Pp, Dp=Dp, NO=NO)
    return prepped, meta


# ----------------------------------------------------------------------------
# BPWaveformRegressor forward
# ----------------------------------------------------------------------------
def bp_waveform_regressor(x, prepped, *, S, D, P, O, Pp, Dp, NO,
                          compute_dtype=jnp.bfloat16):
    """x: (B, 1, L) float32 waveform with L = S * P.  Returns (B, O) float32."""
    B, C, L = x.shape
    assert C == 1 and L == S * P

    cdt_size = jnp.dtype(compute_dtype).itemsize
    TM, Bp = _pick_batch_tile(B)
    # Shrink the batch tile until the VMEM working set fits the v7x budget.
    while TM > 8 and _vmem_bytes(TM, Pp, Dp, NO, cdt_size) > _V7X_SAFE_VMEM:
        TM //= 2
        Bp = _round_up(_round_up(B, 8), TM)
    need = _vmem_bytes(TM, Pp, Dp, NO, cdt_size)
    vmem_limit = int(min(_VMEM_CAP, max(32 * 1024 * 1024, 2 * need)))

    # Activations: (B,1,L) -> (B,S,P) -> per-patch lane padding -> (Bp, S*Pp).
    xp = x.reshape(B, S, P)
    xp = jnp.pad(xp, ((0, Bp - B), (0, 0), (0, Pp - P)))
    xp = xp.reshape(Bp, S * Pp).astype(compute_dtype)

    n_bt = Bp // TM
    cost = pl.CostEstimate(
        flops=int(2 * Bp * S * Pp * Dp + 2 * Bp * S * Dp * NO),
        transcendentals=int(Bp * S * Dp),
        bytes_accessed=int(Bp * S * Pp * cdt_size          # x
                           + Pp * Dp * cdt_size            # enc_w
                           + Dp * 4                        # enc_b
                           + n_bt * S * Dp * NO * cdt_size # streamed head_w
                           + NO * 4                        # head_b
                           + Bp * NO * 4),                 # out
    )

    out = pl.pallas_call(
        _fused_regressor_kernel,
        out_shape=jax.ShapeDtypeStruct((Bp, NO), jnp.float32),
        grid=(n_bt, S),
        in_specs=[
            # per-(batch tile, patch) activation block
            pl.BlockSpec((TM, Pp), lambda i, s: (i, s)),
            # grid-invariant encoder weight / biases: single-buffered
            pl.BlockSpec((Pp, Dp), lambda i, s: (0, 0),
                         pipeline_mode=pl.Buffered(1)),
            pl.BlockSpec((1, Dp), lambda i, s: (0, 0),
                         pipeline_mode=pl.Buffered(1)),
            # per-patch regressor-head slice: streamed, double-buffered
            pl.BlockSpec((Dp, NO), lambda i, s: (s, 0)),
            pl.BlockSpec((1, NO), lambda i, s: (0, 0),
                         pipeline_mode=pl.Buffered(1)),
        ],
        out_specs=pl.BlockSpec((TM, NO), lambda i, s: (i, 0)),
        scratch_shapes=[pltpu.VMEM((TM, NO), jnp.float32)],
        compiler_params=pltpu.CompilerParams(
            dimension_semantics=("parallel", "arbitrary"),
            vmem_limit_bytes=vmem_limit,
        ),
        cost_estimate=cost,
    )(xp, prepped["enc_w"], prepped["enc_b"], prepped["head_w"], prepped["head_b"])

    return out[:B, :O]


# ----------------------------------------------------------------------------
# Deterministic parameter init (shapes implied by the module __init__)
# ----------------------------------------------------------------------------
def init_params(key, patch, encoder_output_dim, encoder_seq_len, output_seq_len):
    k1, k2, k3, k4 = jax.random.split(key, 4)
    in_feat = encoder_seq_len * encoder_output_dim
    return {
        "enc_w": jax.random.normal(k1, (patch, encoder_output_dim), jnp.float32) * 0.1,
        "enc_b": jax.random.normal(k2, (encoder_output_dim,), jnp.float32) * 0.1,
        # nn.Linear(in=seq*dim, out=output_seq_len), stored transposed (in, out)
        "head_w": jax.random.normal(k3, (in_feat, output_seq_len), jnp.float32) * 0.05,
        "head_b": jax.random.normal(k4, (output_seq_len,), jnp.float32) * 0.05,
    }


if __name__ == "__main__":
    # Small shapes consistent with the forward:
    #   batch=2, encoder_seq_len=8, encoder_output_dim=32, output_seq_len=16
    B = 2
    ENC_SEQ = 8
    ENC_DIM = 32
    OUT_SEQ = 16
    PATCH = 8
    L = ENC_SEQ * PATCH          # input waveform length = 64

    key = jax.random.PRNGKey(0)
    kx, kp = jax.random.split(key)
    x = jax.random.normal(kx, (B, 1, L), jnp.float32)
    params = init_params(kp, PATCH, ENC_DIM, ENC_SEQ, OUT_SEQ)

    # Pure-JAX reference (exactly the PyTorch forward of the stand-in model).
    feats_ref = jnp.tanh(
        x.reshape(B * ENC_SEQ, PATCH) @ params["enc_w"] + params["enc_b"]
    ).reshape(B, ENC_SEQ * ENC_DIM)
    ref = feats_ref @ params["head_w"] + params["head_b"]

    # --- f32 MXU-input path (strict correctness check) ---
    prepped32, meta = prepare_params(
        params, encoder_seq_len=ENC_SEQ, encoder_output_dim=ENC_DIM,
        compute_dtype=jnp.float32)
    fwd32 = jax.jit(functools.partial(
        bp_waveform_regressor, compute_dtype=jnp.float32, **meta))
    preds = jax.block_until_ready(fwd32(x, prepped32))
    assert preds.shape == (B, OUT_SEQ)
    assert jnp.allclose(preds, ref, atol=1e-5, rtol=1e-5)

    # --- bf16 MXU-input path (default; recommended on v5e/v6e/v7x) ---
    prepped16, meta16 = prepare_params(
        params, encoder_seq_len=ENC_SEQ, encoder_output_dim=ENC_DIM,
        compute_dtype=jnp.bfloat16)
    fwd16 = jax.jit(functools.partial(
        bp_waveform_regressor, compute_dtype=jnp.bfloat16, **meta16))
    preds16 = jax.block_until_ready(fwd16(x, prepped16))
    assert preds16.shape == (B, OUT_SEQ)
    assert jnp.allclose(preds16, ref, atol=5e-2, rtol=5e-2)

    print("KERNEL_OK")
</pallas_src>

<mosaic_0001>
module attributes {stable_mosaic.version = 11 : i64} {
  func.func @_fused_regressor_kernel(%arg0: i32, %arg1: i32, %arg2: memref<8x128xf32, #tpu.memory_space<vmem>>, %arg3: memref<128x128xf32, #tpu.memory_space<vmem>>, %arg4: memref<1x128xf32, #tpu.memory_space<vmem>>, %arg5: memref<128x128xf32, #tpu.memory_space<vmem>>, %arg6: memref<1x128xf32, #tpu.memory_space<vmem>>, %arg7: memref<8x128xf32, #tpu.memory_space<vmem>>, %arg8: memref<8x128xf32, #tpu.memory_space<vmem>>) attributes {dimension_semantics = [#tpu.dimension_semantics<parallel>, #tpu.dimension_semantics<arbitrary>], iteration_bounds = array<i64: 1, 8>, scalar_prefetch = 0 : i64, scratch_operands = 1 : i64, tpu.core_type = #tpu.core_type<tc>, window_params = [{transform_indices = @transform_0, window_bounds = array<i64: 8, 128>}, {pipeline_mode = #tpu.pipeline_mode<synchronous>, transform_indices = @transform_1, window_bounds = array<i64: 128, 128>}, {pipeline_mode = #tpu.pipeline_mode<synchronous>, transform_indices = @transform_2, window_bounds = array<i64: 1, 128>}, {transform_indices = @transform_3, window_bounds = array<i64: 128, 128>}, {pipeline_mode = #tpu.pipeline_mode<synchronous>, transform_indices = @transform_4, window_bounds = array<i64: 1, 128>}, {transform_indices = @transform_5, window_bounds = array<i64: 8, 128>}]} {
    %c0_i32 = arith.constant 0 : i32
    %0 = arith.cmpi eq, %arg1, %c0_i32 : i32
    %1 = arith.extui %0 : i1 to i32
    %c0_i32_0 = arith.constant 0 : i32
    %2 = arith.cmpi ne, %1, %c0_i32_0 : i32
    scf.if %2 {
      %cst_14 = arith.constant 0.000000e+00 : f32
      %18 = vector.broadcast %cst_14 : f32 to vector<8x128xf32>
      %c0_15 = arith.constant 0 : index
      %c0_16 = arith.constant 0 : index
      %19 = vector.load %arg8[%c0_15, %c0_16] : memref<8x128xf32, #tpu.memory_space<vmem>>, vector<8x128xf32>
      tpu.vector_store %arg8[%c0_15, %c0_16], %18 {strides = array<i32>} : memref<8x128xf32, #tpu.memory_space<vmem>>, vector<8x128xf32>,
    } else {
    }
    %c0 = arith.constant 0 : index
    %c0_1 = arith.constant 0 : index
    %3 = vector.load %arg2[%c0, %c0_1] : memref<8x128xf32, #tpu.memory_space<vmem>>, vector<8x128xf32>
    %c0_2 = arith.constant 0 : index
    %c0_3 = arith.constant 0 : index
    %4 = vector.load %arg3[%c0_2, %c0_3] : memref<128x128xf32, #tpu.memory_space<vmem>>, vector<128x128xf32>
    %cst = arith.constant dense<0.000000e+00> : vector<8x128xf32>
    %5 = tpu.matmul %3, %4, %cst {dimension_numbers = #tpu.dot_dimension_numbers<[1], [0], [0], [1], [0, 0, 1, 1], [], []>} : vector<8x128xf32>, vector<128x128xf32>, vector<8x128xf32> -> vector<8x128xf32>
    %c0_4 = arith.constant 0 : index
    %c0_5 = arith.constant 0 : index
    %6 = vector.load %arg4[%c0_4, %c0_5] : memref<1x128xf32, #tpu.memory_space<vmem>>, vector<1x128xf32>
    %7 = vector.broadcast %6 : vector<1x128xf32> to vector<8x128xf32>
    %8 = arith.addf %5, %7 : vector<8x128xf32>
    %9 = math.tanh %8 : vector<8x128xf32>
    %c0_6 = arith.constant 0 : index
    %c0_7 = arith.constant 0 : index
    %10 = vector.load %arg8[%c0_6, %c0_7] : memref<8x128xf32, #tpu.memory_space<vmem>>, vector<8x128xf32>
    %c0_8 = arith.constant 0 : index
    %c0_9 = arith.constant 0 : index
    %11 = vector.load %arg5[%c0_8, %c0_9] : memref<128x128xf32, #tpu.memory_space<vmem>>, vector<128x128xf32>
    %cst_10 = arith.constant dense<0.000000e+00> : vector<8x128xf32>
    %12 = tpu.matmul %9, %11, %cst_10 {dimension_numbers = #tpu.dot_dimension_numbers<[1], [0], [0], [1], [0, 0, 1, 1], [], []>} : vector<8x128xf32>, vector<128x128xf32>, vector<8x128xf32> -> vector<8x128xf32>
    %13 = arith.addf %10, %12 : vector<8x128xf32>
    %c0_11 = arith.constant 0 : index
    %c0_12 = arith.constant 0 : index
    %14 = vector.load %arg8[%c0_11, %c0_12] : memref<8x128xf32, #tpu.memory_space<vmem>>, vector<8x128xf32>
    tpu.vector_store %arg8[%c0_11, %c0_12], %13 {strides = array<i32>} : memref<8x128xf32, #tpu.memory_space<vmem>>, vector<8x128xf32>,
    %c7_i32 = arith.constant 7 : i32
    %15 = arith.cmpi eq, %arg1, %c7_i32 : i32
    %16 = arith.extui %15 : i1 to i32
    %c0_i32_13 = arith.constant 0 : i32
    %17 = arith.cmpi ne, %16, %c0_i32_13 : i32
    scf.if %17 {
      %c0_14 = arith.constant 0 : index
      %c0_15 = arith.constant 0 : index
      %18 = vector.load %arg8[%c0_14, %c0_15] : memref<8x128xf32, #tpu.memory_space<vmem>>, vector<8x128xf32>
      %c0_16 = arith.constant 0 : index
      %c0_17 = arith.constant 0 : index
      %19 = vector.load %arg6[%c0_16, %c0_17] : memref<1x128xf32, #tpu.memory_space<vmem>>, vector<1x128xf32>
      %20 = vector.broadcast %19 : vector<1x128xf32> to vector<8x128xf32>
      %21 = arith.addf %18, %20 : vector<8x128xf32>
      %c0_18 = arith.constant 0 : index
      %c0_19 = arith.constant 0 : index
      %22 = vector.load %arg7[%c0_18, %c0_19] : memref<8x128xf32, #tpu.memory_space<vmem>>, vector<8x128xf32>
      tpu.vector_store %arg7[%c0_18, %c0_19], %21 {strides = array<i32>} : memref<8x128xf32, #tpu.memory_space<vmem>>, vector<8x128xf32>,
    } else {
    }
    return
  }
  func.func @transform_0(%arg0: i32, %arg1: i32) -> (i32, i32) {
    %c0_i32 = arith.constant 0 : i32
    return %arg0, %arg1 : i32, i32
  }
  func.func @transform_1(%arg0: i32, %arg1: i32) -> (i32, i32) {
    %c0_i32 = arith.constant 0 : i32
    %c0_i32_0 = arith.constant 0 : i32
    %c0_i32_1 = arith.constant 0 : i32
    return %c0_i32, %c0_i32_0 : i32, i32
  }
  func.func @transform_2(%arg0: i32, %arg1: i32) -> (i32, i32) {
    %c0_i32 = arith.constant 0 : i32
    %c0_i32_0 = arith.constant 0 : i32
    %c0_i32_1 = arith.constant 0 : i32
    return %c0_i32, %c0_i32_0 : i32, i32
  }
  func.func @transform_3(%arg0: i32, %arg1: i32) -> (i32, i32) {
    %c0_i32 = arith.constant 0 : i32
    %c0_i32_0 = arith.constant 0 : i32
    return %arg1, %c0_i32 : i32, i32
  }
  func.func @transform_4(%arg0: i32, %arg1: i32) -> (i32, i32) {
    %c0_i32 = arith.constant 0 : i32
    %c0_i32_0 = arith.constant 0 : i32
    %c0_i32_1 = arith.constant 0 : i32
    return %c0_i32, %c0_i32_0 : i32, i32
  }
  func.func @transform_5(%arg0: i32, %arg1: i32) -> (i32, i32) {
    %c0_i32 = arith.constant 0 : i32
    %c0_i32_0 = arith.constant 0 : i32
    return %arg0, %c0_i32 : i32, i32
  }
}

</mosaic_0001>

<bundles_post_ra>
// kernel: bp_waveform_regressor.1
= control target key start
LH: loop header
LB: loop body
LE: loop exit
PB: predicated region body
PF: predicated region fallthrough
CT: control target
= control target key end

     0   :  { %10 = vsyncpa [#allocation4], 0  ;;  %s834_s0 = inlined_call_operand.vmem [shape: f32[8,1024], index: 0, kind: input, shape index: {}]   ;;  %s835_s1 = inlined_call_operand.vmem [shape: f32[128,128], index: 1, kind: input, shape index: {}]   ;;  %s836_s2 = inlined_call_operand.vmem [shape: f32[1,128], index: 2, kind: input, shape index: {}]   ;;  %s837_s3 = inlined_call_operand.hbm [shape: f32[1024,128], index: 3, kind: input, shape index: {}]   ;;  %s838_s4 = inlined_call_operand.vmem [shape: f32[1,128], index: 4, kind: input, shape index: {}]   ;;  %s839_s5 = inlined_call_operand.vmem [shape: f32[8,128], index: 5, kind: output, shape index: {}]  }
   0x1   :  { %12 = vsyncpa [#allocation4 + $0x1], 0  ;;  %s666_s18 = smov 0   ;;  %s668_s19 = smov 0  }
   0x2   :  { %s670_s20 = smov 0   ;;  %s672_s21 = smov 0  }
   0x3   :  { %s674_s22 = smov 0   ;;  %s676_s23 = smov 0  }
   0x4 LB: > { %s474_s24 = sadd.s32 4294967295, %s631_s23   ;;  %s27_s25 = sadd.s32 1, %s627_s22  ;;  %s631_s23 = sphi %s676_s23, %s18_s23   ;;  %s627_s22 = sphi %s674_s22, %s846_s22   ;;  %s623_s21 = sphi %s672_s21, %s845_s21   ;;  %s619_s20 = sphi %s670_s20, %s844_s20   ;;  %s615_s19 = sphi %s668_s19, %s843_s19   ;;  %s611_s18 = sphi %s666_s18, %s842_s18  }
   0x5   : > { %p28_p0 = scmp.ge.s32.totalorder %s27_s25, 8  ;;  %s107_s26 = sadd.s32 1, %s619_s20 }
   0x6   : > { %p114_p1 = scmp.ne.s32.totalorder %s619_s20, %s615_s19  ;;  %p115_p2 = scmp.eq.s32.totalorder %s631_s23, 0 }
   0x7   : > { %s848_s25 = smov (%p28_p0, %s27_s25), 0  ;;  %p120_p4 = scmp.ne.s32.totalorder %s615_s19, %s611_s18 }
   0x8   : > { %p702_p3 = por %p115_p2, %p114_p1  ;;  %s104_s28 = ssub.s32 %s627_s22, %s848_s25 }
   0x9   : > { %p121_p5 = scmp.eq.s32.totalorder %s474_s24, 0  ;;  %p105_p6 = scmp.eq.s32.totalorder %s104_s28, 0 }
   0xa   : > { %p495_p8 = scmp.lt.s32.totalorder %s631_s23, 8  ;;  %s211_s6 = sand.u32 1, %s619_s20  }
   0xb   : > { %p709_p7 = por %p121_p5, %p120_p4  ;;  %s488_s7 = sshll.u32 %s627_s22, 7 }
   0xc   : > { %s715_s30 = scalar_select %p105_p6, %s619_s20, %s107_s26  }
   0xd   : > { %s477_s8 = sshll.u32 %s211_s6, 7  ;;  %s220_s11 = scalar_lea.hbm %s837_s3, %s488_s7 }
   0xe   : > { %s221_s12 = sshll.u32 %s220_s11, 4  ;;  %s215_s13 = scalar_lea.vmem [#allocation3], %s477_s8  ;;  %s222_s12 = int_to_ptr.hbm [resolvable:$true] %s221_s12 }
   0xf   : > { %s223_s14 = sshll.u32 %s215_s13, 4  ;;  %p492_p9 = pnand %p495_p8, %p702_p3  ;;  %s224_s14 = int_to_ptr.vmem [resolvable:$true] %s223_s14 }
  0x10   : > { %p480_p10 = scmp.ge.s32.totalorder %s631_s23, 1  ;;  %p231_p11 = scmp.lt.s32.totalorder %s631_s23, 9 }
  0x11   : > { %s212_s15 = scalar_lea.sflag [#allocation4], %s211_s6  ;;  %s633_s16 = smov 128  }
  0x12   : > { %s634_s17 = smov 8   ;;  %p232_p12 = pnand %p480_p10, %p231_p11 }
  0x13   : > { %494 = dma.hbm_to_vmem [thread:$0]  (!%p492_p9), %s222_s12, 2048, %s224_s14, %s212_s15, %s633_s16, %s633_s16, %s634_s17  }
  0x14   : > { %235 = sbr.rel (%p232_p12) target bundleno = 342 (0x156), region = 40  ;;  %s237_s18 = sand.u32 (!%p232_p12), 1, %s615_s19  }
  0x15   : > { %s481_s24 = sshll.u32 (!%p232_p12), %s237_s18, 7  ;;  %s238_s26 = scalar_lea.sflag (!%p232_p12), [#allocation4], %s237_s18 }
  0x16   : > { %s727_s28 = scalar_lea.vmem (!%p232_p12), [#allocation3], %s481_s24 }
  0x19   : > { %606 = dma.done.wait (%p709_p7), %s238_s26, 2048  }
  0x1a   : > { %608 = vsyncadd (%p709_p7), %s238_s26, 4294965248  ;;  %p278_p13 = scmp.lt.s32.totalorder %s623_s21, 7  ;;  %p483_p0 = scmp.ne.s32.totalorder %s623_s21, 0 }
  0x1c   : > { %s279_s27 = scalar_select %p278_p13, %s623_s21, 7 }
  0x1d   : > { %292 = sbr.rel (%p483_p0) target bundleno = 36 (0x24), region = 48 }
  0x1e   : > { %s482_s6 = sshll.u32 %s279_s27, 3 }
  0x1f   : > { %s738_s9 = scalar_lea.vmem %s834_s0, %s482_s6 }
  0x22   : > { %v635_v0 = vmov 0.0  }
  0x23   : > { %293 = vst [vmem:[#allocation2] sm:$0xff] %v635_v0 }
  0x24 PF: > { %v310_v1 = vld [vmem:[%s835_s1 + $0x78] sm:$0xff]  ;;  %v309_v2 = vld [vmem:[%s835_s1 + $0x70] sm:$0xff]  ;;  %v308_v3 = vld [vmem:[%s835_s1 + $0x68] sm:$0xff]  ;;  %p484_p1 = scmp.ne.s32.totalorder %s623_s21, 7 }
  0x25   : > { %315 = vmatpush.msra.mxu0 %v310_v1  ;;  %v307_v4 = vld [vmem:[%s835_s1 + $0x60] sm:$0xff]  ;;  %v306_v6 = vld [vmem:[%s835_s1 + $0x58] sm:$0xff]  ;;  %v350_v8 = vld [vmem:[%s727_s28 + $0x68] sm:$0xff] }
  0x26   : > { %v352_v5 = vld [vmem:[%s727_s28 + $0x78] sm:$0xff]  ;;  %v351_v7 = vld [vmem:[%s727_s28 + $0x70] sm:$0xff]  ;;  %v305_v9 = vld [vmem:[%s835_s1 + $0x50] sm:$0xff] }
  0x27   : > { %316 = vmatpush.msra.mxu0 %v309_v2  ;;  %353 = vmatpush.msra.mxu1 %v352_v5  ;;  %v349_v10 = vld [vmem:[%s727_s28 + $0x60] sm:$0xff]  ;;  %v348_v12 = vld [vmem:[%s727_s28 + $0x58] sm:$0xff]  ;;  %v347_v14 = vld [vmem:[%s727_s28 + $0x50] sm:$0xff] }
  0x28   : > { %v304_v11 = vld [vmem:[%s835_s1 + $0x48] sm:$0xff]  ;;  %v303_v13 = vld [vmem:[%s835_s1 + $0x40] sm:$0xff]  ;;  %v302_v15 = vld [vmem:[%s835_s1 + $0x38] sm:$0xff] }
  0x29   : > { %317 = vmatpush.msra.mxu0 %v308_v3  ;;  %354 = vmatpush.msra.mxu1 %v351_v7  ;;  %v346_v16 = vld [vmem:[%s727_s28 + $0x48] sm:$0xff]  ;;  %v345_v18 = vld [vmem:[%s727_s28 + $0x40] sm:$0xff]  ;;  %v344_v20 = vld [vmem:[%s727_s28 + $0x38] sm:$0xff] }
  0x2a   : > { %v301_v17 = vld [vmem:[%s835_s1 + $0x30] sm:$0xff]  ;;  %v300_v19 = vld [vmem:[%s835_s1 + $0x28] sm:$0xff]  ;;  %v299_v21 = vld [vmem:[%s835_s1 + $0x20] sm:$0xff] }
  0x2b   : > { %318 = vmatpush.msra.mxu0 %v307_v4  ;;  %355 = vmatpush.msra.mxu1 %v350_v8  ;;  %v343_v22 = vld [vmem:[%s727_s28 + $0x30] sm:$0xff]  ;;  %v342_v24 = vld [vmem:[%s727_s28 + $0x28] sm:$0xff]  ;;  %v296_v26 = vld [vmem:[%s835_s1 + $0x8] sm:$0xff] }
  0x2c   : > { %v298_v23 = vld [vmem:[%s835_s1 + $0x18] sm:$0xff]  ;;  %v297_v25 = vld [vmem:[%s835_s1 + $0x10] sm:$0xff]  ;;  %v295_v27 = vld [vmem:[%s835_s1] sm:$0xff] }
  0x2d   : > { %319 = vmatpush.msra.mxu0 %v306_v6  ;;  %356 = vmatpush.msra.mxu1 %v349_v10  ;;  %v294_v28 = vld [vmem:[%s738_s9] sm:$0xff]  ;;  %v341_v29 = vld [vmem:[%s727_s28 + $0x20] sm:$0xff]  ;;  %v339_v31 = vld [vmem:[%s727_s28 + $0x10] sm:$0xff] }
  0x2e   : > { %v340_v30 = vld [vmem:[%s727_s28 + $0x18] sm:$0xff]  ;;  %v338_v32 = vld [vmem:[%s727_s28 + $0x8] sm:$0xff]  ;;  %v337_v33 = vld [vmem:[%s727_s28] sm:$0xff] }
  0x2f   : > { %320 = vmatpush.msra.mxu0 %v305_v9  ;;  %357 = vmatpush.msra.mxu1 %v348_v12  ;;  %v547_v34 = vld [vmem:[%s836_s2] ss:$0 sm:$0xff] }
  0x30   : > { %v336_v38 = vld [vmem:[#allocation2] sm:$0xff] }
  0x31   : > { %321 = vmatpush.msra.mxu0 %v304_v11  ;;  %358 = vmatpush.msra.mxu1 %v347_v14 }
  0x33   : > { %322 = vmatpush.msra.mxu0 %v303_v13  ;;  %359 = vmatpush.msra.mxu1 %v346_v16 }
  0x35   : > { %323 = vmatpush.msra.mxu0 %v302_v15  ;;  %360 = vmatpush.msra.mxu1 %v345_v18 }
  0x37   : > { %324 = vmatpush.msra.mxu0 %v301_v17  ;;  %361 = vmatpush.msra.mxu1 %v344_v20 }
  0x39   : > { %325 = vmatpush.msra.mxu0 %v300_v19  ;;  %362 = vmatpush.msra.mxu1 %v343_v22 }
  0x3b   : > { %326 = vmatpush.msra.mxu0 %v299_v21  ;;  %363 = vmatpush.msra.mxu1 %v342_v24 }
  0x3d   : > { %327 = vmatpush.msra.mxu0 %v298_v23  ;;  %364 = vmatpush.msra.mxu1 %v341_v29 }
  0x3f   : > { %328 = vmatpush.msra.mxu0 %v297_v25  ;;  %365 = vmatpush.msra.mxu1 %v340_v30 }
  0x41   : > { %329 = vmatpush.msra.mxu0 %v296_v26  ;;  %366 = vmatpush.msra.mxu1 %v339_v31 }
  0x43   : > { %330 = vmatpush.msra.mxu0 %v295_v27  ;;  %367 = vmatpush.msra.mxu1 %v338_v32 }
  0x44   : > { %331 = vmatmul.f32.vlgmr.msra.gmra.mxu0 %v294_v28 }
  0x45   : > { %368 = vmatpush.msra.mxu1 %v337_v33 }
  0xc1   : > { %v332_v35 = vpop.f32.mrf.mxu0 }
  0xc2   : > { %v333_v36 = vadd.f32 %v547_v34, %v332_v35 }
  0xc4   : > { %548 = vtanh.f32 %v333_v36 }
  0xca   : > { %v549_v37 = vpop.eup %548 }
  0xcb   : > { %369 = vmatmul.f32.vlgmr.msra.gmra.mxu1 %v549_v37 }
 0x147   : > { %378 = sbr.rel (%p484_p1) target bundleno = 342 (0x156), region = 52 }
 0x148   : > { %v370_v39 = vpop.f32.mrf.mxu1 }
 0x149   : > { %v373_v40 = vadd.f32 %v370_v39, %v336_v38 }
 0x14b   : > { %374 = vst [vmem:[#allocation2] sm:$0xff] %v373_v40 }
 0x14c   : > { %v550_v42 = vld [vmem:[%s838_s4] ss:$0 sm:$0xff] }
 0x152   : > { %v379_v41 = vld [vmem:[#allocation2] sm:$0xff] }
 0x153   : > { %v384_v43 = vadd.f32 %v550_v42, %v379_v41 }
 0x155   : > { %385 = vst [vmem:[%s839_s5] sm:$0xff] %v384_v43 }
 0x156 PF: > { %s18_s23 = sadd.s32 1, %s631_s23   ;;  %s842_s18 = smov %s615_s19 }
 0x157   : > { %p15_p2 = scmp.ge.s32.totalorder %s18_s23, 10   ;;  %s843_s19 = smov %s619_s20 }
 0x158   : > { %s844_s20 = smov %s715_s30  ;;  %s845_s21 = smov %s627_s22 }
 0x159   : > { %s846_s22 = smov %s848_s25  ;;  %17 = sbr.rel (!%p15_p2) target bundleno = 4 (0x4), region = 91 }
 0x15e   :  { %405 = vsyncpa [#allocation4], 1 }
 0x15f   :  { %407 = vsyncpa [#allocation4 + $0x1], 1 }

</bundles_post_ra>
